<compile_context>
chip_gen: v5e
topology: v5e:2x2
jax: 0.10.0
libtpu: 0.0.40
codegen_flags: <defaults>
</compile_context>

<pallas_src>
import jax
import jax.numpy as jnp
from jax import lax
from jax.experimental import pallas as pl
from jax.experimental.pallas import tpu as pltpu


def _round_up(x, m):
    return ((x + m - 1) // m) * m


def _vq_kernel(x_ref, e_ref, et_ref, e2_ref, q_ref, idx_ref):
    x = x_ref[...]        # (D, TN) f32  one column per spatial position
    e = e_ref[...]        # (D, K)  f32  codebook
    et = et_ref[...]      # (K, D)  f32  codebook^T   (hoisted in wrapper)
    e2 = e2_ref[...]      # (K, 1)  f32  ||e_k||^2    (hoisted in wrapper)

    k = et.shape[0]

    # squared distances, transposed: dist[k, n] = ||x_n||^2 - 2 e_k.x_n + ||e_k||^2
    x2 = jnp.sum(x * x, axis=0, keepdims=True)                        # (1, TN)
    xe = jnp.dot(et, x, preferred_element_type=jnp.float32)           # (K, TN)
    dist = x2 - 2.0 * xe + e2                                         # (K, TN)

    # argmax of -dist along the small sublane axis, first-index tie break
    # (matches torch (-dist).max(1)).  Indices are tiny ints, exactly
    # representable in f32, so only plain f32 reductions are emitted.
    neg = -dist
    m = jnp.max(neg, axis=0, keepdims=True)                           # (1, TN)
    iota = lax.broadcasted_iota(jnp.int32, neg.shape, 0).astype(jnp.float32)
    idx_f = jnp.min(jnp.where(neg == m, iota, jnp.float32(k)),
                    axis=0, keepdims=True)                            # (1, TN)

    # gather codebook columns via a one-hot matmul on the MXU: (D,K)@(K,TN)
    onehot = (iota == idx_f).astype(jnp.float32)                      # (K, TN)
    quant = jnp.dot(e, onehot, preferred_element_type=jnp.float32)    # (D, TN)

    q_ref[...] = quant
    idx_ref[...] = idx_f.astype(jnp.int32)


def vq_nchw(x_nchw, embed, *, tile_n=1024):
    """x_nchw: (B, D, H, W) f32, embed: (D, K) f32.
    Returns (quantize (B, D, H, W) f32, indices (B, H, W) int32)."""
    B, D, H, W = x_nchw.shape
    K = embed.shape[1]
    HW = H * W

    # Natural NCHW flatten -- a free reshape, no transpose needed.
    x_flat = x_nchw.reshape(B, D, HW)

    # Tile the spatial (lane) axis; pad so arbitrary H*W works.  Padded
    # columns are computed and discarded.
    tn = min(tile_n, _round_up(HW, 128))
    hw_pad = _round_up(HW, tn)
    if hw_pad != HW:
        x_flat = jnp.pad(x_flat, ((0, 0), (0, 0), (0, hw_pad - HW)))
    grid = (B, hw_pad // tn)

    # Loop-invariant codebook terms, hoisted out of the per-step kernel body.
    et = jnp.transpose(embed)                                 # (K, D)
    e2 = jnp.sum(embed * embed, axis=0).reshape(K, 1)         # (K, 1)

    q, idx = pl.pallas_call(
        _vq_kernel,
        out_shape=(
            jax.ShapeDtypeStruct((B, D, hw_pad), jnp.float32),
            jax.ShapeDtypeStruct((B, 1, hw_pad), jnp.int32),
        ),
        grid_spec=pltpu.PrefetchScalarGridSpec(
            num_scalar_prefetch=0,
            grid=grid,
            in_specs=[
                pl.BlockSpec((None, D, tn), lambda b, j: (b, 0, j)),  # x^T tile
                pl.BlockSpec((D, K), lambda b, j: (0, 0)),            # codebook
                pl.BlockSpec((K, D), lambda b, j: (0, 0)),            # codebook^T
                pl.BlockSpec((K, 1), lambda b, j: (0, 0)),            # ||e||^2
            ],
            out_specs=(
                pl.BlockSpec((None, D, tn), lambda b, j: (b, 0, j)),  # quantize^T
                pl.BlockSpec((None, 1, tn), lambda b, j: (b, 0, j)),  # indices
            ),
        ),
        compiler_params=pltpu.CompilerParams(
            dimension_semantics=("parallel", "parallel")),
    )(x_flat, embed, et, e2)

    q = q[:, :, :HW].reshape(B, D, H, W)          # already NCHW
    idx = idx[:, 0, :HW].reshape(B, H, W)
    return q, idx


def new_vector_quantizer_forward(x_nchw, embed):
    """Mirrors NewVectorQuantizer.forward.
    x_nchw: (B, D, H, W), embed: (D, K).
    Returns (quantize_with_grad NCHW, quantize NCHW, embed_ind (B, H, W))."""
    q, idx = vq_nchw(x_nchw, embed)
    # Straight-through estimator in the wrapper (pallas_call has no VJP):
    # forward value == quantize, gradient w.r.t. x is identity.
    qwg = x_nchw + lax.stop_gradient(q - x_nchw)
    return qwg, q, idx


if __name__ == "__main__":
    # module config
    num_embeddings = 8
    embedding_dim = 4

    key = jax.random.PRNGKey(0)
    k_embed, k_x = jax.random.split(key)

    # deterministic parameter init: uniform(-0.05, 0.05), shape (D, K)
    embed = jax.random.uniform(
        k_embed, (embedding_dim, num_embeddings),
        minval=-0.05, maxval=0.05, dtype=jnp.float32)

    # small NCHW input consistent with the module (channels == embedding_dim)
    x = jax.random.normal(k_x, (2, embedding_dim, 16, 16), dtype=jnp.float32)

    fwd = jax.jit(new_vector_quantizer_forward)
    qwg, q, idx = fwd(x, embed)
    jax.block_until_ready((qwg, q, idx))

    # lightweight correctness check against a pure-JAX reference
    x_nhwc = jnp.transpose(x, (0, 2, 3, 1)).reshape(-1, embedding_dim)
    dist_ref = (jnp.sum(x_nhwc ** 2, 1, keepdims=True)
                - 2.0 * x_nhwc @ embed
                + jnp.sum(embed ** 2, 0, keepdims=True))
    idx_ref = jnp.argmax(-dist_ref, axis=1).reshape(2, 16, 16)
    q_ref = embed.T[idx_ref.reshape(-1)].reshape(2, 16, 16, embedding_dim)
    q_ref = jnp.transpose(q_ref, (0, 3, 1, 2))
    assert idx.shape == (2, 16, 16)
    assert jnp.all(idx == idx_ref.astype(jnp.int32))
    assert jnp.allclose(q, q_ref, atol=1e-6)
    assert jnp.allclose(qwg, q_ref, atol=1e-6)

    print("KERNEL_OK")
</pallas_src>

<mosaic_0001>
module attributes {stable_mosaic.version = 11 : i64} {
  func.func @_vq_kernel(%arg0: i32, %arg1: i32, %arg2: memref<1x4x256xf32, #tpu.memory_space<vmem>>, %arg3: memref<4x8xf32, #tpu.memory_space<vmem>>, %arg4: memref<8x4xf32, #tpu.memory_space<vmem>>, %arg5: memref<8x1xf32, #tpu.memory_space<vmem>>, %arg6: memref<1x4x256xf32, #tpu.memory_space<vmem>>, %arg7: memref<1x1x256xi32, #tpu.memory_space<vmem>>) attributes {dimension_semantics = [#tpu.dimension_semantics<parallel>, #tpu.dimension_semantics<parallel>], iteration_bounds = array<i64: 2, 1>, scalar_prefetch = 0 : i64, scratch_operands = 0 : i64, tpu.core_type = #tpu.core_type<tc>, window_params = [{transform_indices = @transform_0, window_bounds = array<i64: 1, 4, 256>}, {pipeline_mode = #tpu.pipeline_mode<synchronous>, transform_indices = @transform_1, window_bounds = array<i64: 4, 8>}, {pipeline_mode = #tpu.pipeline_mode<synchronous>, transform_indices = @transform_2, window_bounds = array<i64: 8, 4>}, {pipeline_mode = #tpu.pipeline_mode<synchronous>, transform_indices = @transform_3, window_bounds = array<i64: 8, 1>}, {transform_indices = @transform_4, window_bounds = array<i64: 1, 4, 256>}, {transform_indices = @transform_5, window_bounds = array<i64: 1, 1, 256>}]} {
    %c0 = arith.constant 0 : index
    %c0_0 = arith.constant 0 : index
    %c0_1 = arith.constant 0 : index
    %0 = vector.load %arg2[%c0, %c0_0, %c0_1] : memref<1x4x256xf32, #tpu.memory_space<vmem>>, vector<1x4x256xf32>
    %1 = vector.shape_cast %0 : vector<1x4x256xf32> to vector<4x256xf32>
    %c0_2 = arith.constant 0 : index
    %c0_3 = arith.constant 0 : index
    %2 = vector.load %arg3[%c0_2, %c0_3] : memref<4x8xf32, #tpu.memory_space<vmem>>, vector<4x8xf32>
    %c0_4 = arith.constant 0 : index
    %c0_5 = arith.constant 0 : index
    %3 = vector.load %arg4[%c0_4, %c0_5] : memref<8x4xf32, #tpu.memory_space<vmem>>, vector<8x4xf32>
    %c0_6 = arith.constant 0 : index
    %c0_7 = arith.constant 0 : index
    %4 = vector.load %arg5[%c0_6, %c0_7] : memref<8x1xf32, #tpu.memory_space<vmem>>, vector<8x1xf32>
    %5 = arith.mulf %1, %1 : vector<4x256xf32>
    %cst = arith.constant dense<0.000000e+00> : vector<256xf32>
    %6 = vector.multi_reduction <add>, %5, %cst [0] : vector<4x256xf32> to vector<256xf32>
    %7 = vector.shape_cast %6 : vector<256xf32> to vector<1x256xf32>
    %cst_8 = arith.constant dense<0.000000e+00> : vector<8x256xf32>
    %8 = tpu.matmul %3, %1, %cst_8 {dimension_numbers = #tpu.dot_dimension_numbers<[1], [0], [0], [1], [0, 0, 1, 1], [], []>} : vector<8x4xf32>, vector<4x256xf32>, vector<8x256xf32> -> vector<8x256xf32>
    %cst_9 = arith.constant 2.000000e+00 : f32
    %9 = vector.broadcast %cst_9 : f32 to vector<8x256xf32>
    %10 = arith.mulf %9, %8 : vector<8x256xf32>
    %11 = vector.broadcast %7 : vector<1x256xf32> to vector<8x256xf32>
    %12 = arith.subf %11, %10 : vector<8x256xf32>
    %13 = vector.broadcast %4 : vector<8x1xf32> to vector<8x256xf32>
    %14 = arith.addf %12, %13 : vector<8x256xf32>
    %cst_10 = arith.constant 0.000000e+00 : f32
    %15 = vector.broadcast %cst_10 : f32 to vector<8x256xf32>
    %16 = arith.subf %15, %14 : vector<8x256xf32>
    %cst_11 = arith.constant dense<0xFF800000> : vector<256xf32>
    %17 = vector.multi_reduction <maximumf>, %16, %cst_11 [0] : vector<8x256xf32> to vector<256xf32>
    %18 = vector.shape_cast %17 : vector<256xf32> to vector<1x256xf32>
    %19 = tpu.iota {dimensions = array<i32: 0>} : vector<8x256xi32>
    %20 = arith.sitofp %19 : vector<8x256xi32> to vector<8x256xf32>
    %21 = vector.broadcast %18 : vector<1x256xf32> to vector<8x256xf32>
    %22 = arith.cmpf oeq, %16, %21 : vector<8x256xf32>
    %cst_12 = arith.constant 8.000000e+00 : f32
    %23 = vector.broadcast %cst_12 : f32 to vector<8x256xf32>
    %24 = arith.select %22, %20, %23 : vector<8x256xi1>, vector<8x256xf32>
    %cst_13 = arith.constant dense<0x7F800000> : vector<256xf32>
    %25 = vector.multi_reduction <minimumf>, %24, %cst_13 [0] : vector<8x256xf32> to vector<256xf32>
    %26 = vector.shape_cast %25 : vector<256xf32> to vector<1x256xf32>
    %27 = vector.broadcast %26 : vector<1x256xf32> to vector<8x256xf32>
    %28 = arith.cmpf oeq, %20, %27 : vector<8x256xf32>
    %29 = arith.extui %28 : vector<8x256xi1> to vector<8x256xi32>
    %30 = arith.sitofp %29 : vector<8x256xi32> to vector<8x256xf32>
    %cst_14 = arith.constant dense<0.000000e+00> : vector<4x256xf32>
    %31 = tpu.matmul %2, %30, %cst_14 {dimension_numbers = #tpu.dot_dimension_numbers<[1], [0], [0], [1], [0, 0, 1, 1], [], []>} : vector<4x8xf32>, vector<8x256xf32>, vector<4x256xf32> -> vector<4x256xf32>
    %c0_15 = arith.constant 0 : index
    %c0_16 = arith.constant 0 : index
    %c0_17 = arith.constant 0 : index
    %32 = vector.load %arg6[%c0_15, %c0_16, %c0_17] : memref<1x4x256xf32, #tpu.memory_space<vmem>>, vector<1x4x256xf32>
    %33 = vector.shape_cast %32 : vector<1x4x256xf32> to vector<4x256xf32>
    %34 = vector.shape_cast %31 : vector<4x256xf32> to vector<1x4x256xf32>
    tpu.vector_store %arg6[%c0_15, %c0_16, %c0_17], %34 {strides = array<i32>} : memref<1x4x256xf32, #tpu.memory_space<vmem>>, vector<1x4x256xf32>,
    %35 = arith.fptosi %26 : vector<1x256xf32> to vector<1x256xi32>
    %c0_18 = arith.constant 0 : index
    %c0_19 = arith.constant 0 : index
    %c0_20 = arith.constant 0 : index
    %36 = vector.load %arg7[%c0_18, %c0_19, %c0_20] : memref<1x1x256xi32, #tpu.memory_space<vmem>>, vector<1x1x256xi32>
    %37 = vector.shape_cast %36 : vector<1x1x256xi32> to vector<1x256xi32>
    %38 = vector.shape_cast %35 : vector<1x256xi32> to vector<1x1x256xi32>
    tpu.vector_store %arg7[%c0_18, %c0_19, %c0_20], %38 {strides = array<i32>} : memref<1x1x256xi32, #tpu.memory_space<vmem>>, vector<1x1x256xi32>,
    return
  }
  func.func @transform_0(%arg0: i32, %arg1: i32) -> (i32, i32, i32) {
    %c0_i32 = arith.constant 0 : i32
    %c0_i32_0 = arith.constant 0 : i32
    return %arg0, %c0_i32, %arg1 : i32, i32, i32
  }
  func.func @transform_1(%arg0: i32, %arg1: i32) -> (i32, i32) {
    %c0_i32 = arith.constant 0 : i32
    %c0_i32_0 = arith.constant 0 : i32
    %c0_i32_1 = arith.constant 0 : i32
    return %c0_i32, %c0_i32_0 : i32, i32
  }
  func.func @transform_2(%arg0: i32, %arg1: i32) -> (i32, i32) {
    %c0_i32 = arith.constant 0 : i32
    %c0_i32_0 = arith.constant 0 : i32
    %c0_i32_1 = arith.constant 0 : i32
    return %c0_i32, %c0_i32_0 : i32, i32
  }
  func.func @transform_3(%arg0: i32, %arg1: i32) -> (i32, i32) {
    %c0_i32 = arith.constant 0 : i32
    %c0_i32_0 = arith.constant 0 : i32
    %c0_i32_1 = arith.constant 0 : i32
    return %c0_i32, %c0_i32_0 : i32, i32
  }
  func.func @transform_4(%arg0: i32, %arg1: i32) -> (i32, i32, i32) {
    %c0_i32 = arith.constant 0 : i32
    %c0_i32_0 = arith.constant 0 : i32
    return %arg0, %c0_i32, %arg1 : i32, i32, i32
  }
  func.func @transform_5(%arg0: i32, %arg1: i32) -> (i32, i32, i32) {
    %c0_i32 = arith.constant 0 : i32
    %c0_i32_0 = arith.constant 0 : i32
    return %arg0, %c0_i32, %arg1 : i32, i32, i32
  }
}

</mosaic_0001>

<bundles_post_ra>
// kernel: squeeze.1
= control target key start
LH: loop header
LB: loop body
LE: loop exit
PB: predicated region body
PF: predicated region fallthrough
CT: control target
= control target key end

     0   :  { %s144_s0 = inlined_call_operand.vmem [shape: s32[2,256], index: 0, kind: input, shape index: {}]   ;;  %s145_s1 = inlined_call_operand.hbm [shape: s32[2,16,16], index: 1, kind: output, shape index: {}]  }
   0x1   :  { %v73_v0 = vld [vmem:[%s144_s0 + $0x2] sm:$0x3]  ;;  %v9_v1 = vld [vmem:[%s144_s0] sm:$0x3] }
   0x2   :  { %8 = vst [vmem:[#allocation2 + $0x8] sm:$0x3] %v73_v0 }
   0x3   :  { %10 = vst [vmem:[#allocation2] sm:$0x3] %v9_v1 }
   0x4   :  { %2 = vsyncpa [#allocation1], 0  ;;  %s108_s0 = smov 112   ;;  %s109_s10 = smov 80   ;;  %vm12_vm0 = vcmask 130048  }
   0x5   :  { %s110_s11 = smov 48   ;;  %s111_s12 = smov 96  }
   0x6   :  { %s112_s13 = smov 64   ;;  %s113_s14 = smov 32  }
   0x7   :  { %s114_s15 = smov 16   ;;  %s115_s16 = smov [#allocation0]  }
   0x8   :  { %s64_s17 = sshll.u32 %s115_s16, 4  ;;  %s66_s1 = sshll.u32 %s145_s1, 4  ;;  %s65_s17 = int_to_ptr.vmem [resolvable:$true] %s64_s17  ;;  %s67_s1 = int_to_ptr.hbm [resolvable:$true] %s66_s1 }
   0x9   :  { %v15_v5 = vld [vmem:[#allocation2 + $0x8] sm:$0x3]  }
   0xa   :  { %v19_v2 = vld.sshfl [vmem:[#allocation2] sm:$0xff pattern:$0x99999180]   ;;  %18 = vst.msk [vmem:[#allocation0 + $0x8] ss:$16 sm:$0x3] %vm12_vm0, %v15_v5  }
   0xb   :  { %20 = vrot.lane.b32.xlu0 %v19_v2, %s108_s0  ;;  %32 = vrot.lane.b32.xlu1 %v19_v2, %s109_s10  ;;  %v11_v4 = vld [vmem:[#allocation2] sm:$0x3]  }
   0xc   :  { %44 = vrot.lane.b32.xlu2 %v19_v2, %s110_s11  ;;  %13 = vst.msk [vmem:[#allocation0] ss:$16 sm:$0x3] %vm12_vm0, %v11_v4  }
  0x13   :  { %26 = vrot.lane.b32.xlu0 %v19_v2, %s111_s12  ;;  %38 = vrot.lane.b32.xlu1 %v19_v2, %s112_s13 }
  0x14   :  { %50 = vrot.lane.b32.xlu2 %v19_v2, %s113_s14 }
  0x1b   :  { %56 = vrot.lane.b32.xlu0 %v19_v2, %s114_s15 }
  0x66   :  { %v45_v3 = vpop.permute.xlu2 %44  }
  0x67   :  { %48 = vst.msk [vmem:[#allocation0 + $0x5] ss:$8 sm:$0xf] %vm12_vm0, %v45_v3  }
  0x6e   :  { %v51_v6 = vpop.permute.xlu2 %50  }
  0x6f   :  { %54 = vst.msk [vmem:[#allocation0 + $0x6] ss:$8 sm:$0xf] %vm12_vm0, %v51_v6  }
  0x7d   :  { %v21_v7 = vpop.permute.xlu0 %20   ;;  %v33_v8 = vpop.permute.xlu1 %32  }
  0x7e   :  { %24 = vst.msk [vmem:[#allocation0 + $0x1] ss:$8 sm:$0xf] %vm12_vm0, %v21_v7  }
  0x7f   :  { %36 = vst.msk [vmem:[#allocation0 + $0x3] ss:$8 sm:$0xf] %vm12_vm0, %v33_v8  }
  0x85   :  { %v27_v9 = vpop.permute.xlu0 %26   ;;  %v39_v10 = vpop.permute.xlu1 %38  }
  0x86   :  { %30 = vst.msk [vmem:[#allocation0 + $0x2] ss:$8 sm:$0xf] %vm12_vm0, %v27_v9  }
  0x87   :  { %42 = vst.msk [vmem:[#allocation0 + $0x4] ss:$8 sm:$0xf] %vm12_vm0, %v39_v10  }
  0x8d   :  { %v57_v11 = vpop.permute.xlu0 %56  }
  0x8e   :  { %60 = vst.msk [vmem:[#allocation0 + $0x7] ss:$8 sm:$0xf] %vm12_vm0, %v57_v11  }
  0x8f   :  { %69 = dma.vmem_to_hbm [thread:$0]  %s65_s17, 512, %s67_s1, [#allocation1]  }
  0x90   :  { %106 = dma.done.wait [#allocation1], 512  }
  0x91   :  { %107 = vsyncadd [#allocation1], 4294966784 }
  0x92   :  { %72 = vsyncpa [#allocation1], 1 }

// kernel: new_vector_quantizer_forward.1
= control target key start
LH: loop header
LB: loop body
LE: loop exit
PB: predicated region body
PF: predicated region fallthrough
CT: control target
= control target key end

     0   :  { %s722_s18 = smov 0   ;;  %s724_s19 = smov 0   ;;  %s782_s0 = inlined_call_operand.vmem [shape: f32[2,4,256], index: 0, kind: input, shape index: {}]   ;;  %s783_s1 = inlined_call_operand.vmem [shape: f32[4,8], index: 1, kind: input, shape index: {}]   ;;  %s784_s2 = inlined_call_operand.vmem [shape: f32[8,4], index: 2, kind: input, shape index: {}]   ;;  %s785_s3 = inlined_call_operand.vmem [shape: f32[8,1], index: 3, kind: input, shape index: {}]   ;;  %s786_s4 = inlined_call_operand.vmem [shape: f32[2,4,256], index: 4, kind: output, shape index: {0}]   ;;  %s787_s5 = inlined_call_operand.vmem [shape: s32[2,1,256], index: 5, kind: output, shape index: {1}]  }
   0x1   :  { %s726_s20 = smov 0  }
   0x2 LB: > { %s28_s21 = sadd.s32 1, %s684_s19  ;;  %p609_p0 = scmp.ge.s32.totalorder %s688_s20, 1  ;;  %s688_s20 = sphi %s726_s20, %s16_s20   ;;  %s684_s19 = sphi %s724_s19, %s789_s19   ;;  %s680_s18 = sphi %s722_s18, %s788_s18  }
   0x3   : > { %p30_p1 = scmp.ge.s32.totalorder %s28_s21, 2  ;;  %p213_p2 = scmp.lt.s32.totalorder %s688_s20, 3 }
   0x5   : > { %s791_s21 = smov (%p30_p1, %s28_s21), 0  ;;  %p214_p3 = pnand %p609_p0, %p213_p2 }
   0x6   : > { %p258_p4 = scmp.lt.s32.totalorder (!%p214_p3), %s680_s18, 1 }
   0x7   : > { %217 = sbr.rel (%p214_p3) target bundleno = 334 (0x14e), region = 36 }
   0xc   : > { %v289_v0 = vld [vmem:[%s785_s3] sm:$0xff]  ;;  %v690_v1 = vmov 0   ;;  %s793_s18 = smov (!%p258_p4, %s680_s18), 1  ;;  %vm297_vm0 = vcmask 1043456   ;;  %vm316_vm1 = vcmask 31744   ;;  %v389_v36 = vlaneseq }
   0xd   : > { %665 = vset.pattern.permute.xlu0 %v690_v1  ;;  %s627_s24 = sshll.u32 %s793_s18, 3  ;;  %v288_v6 = vld [vmem:[%s784_s2] sm:$0xff]  ;;  %vm414_vm4 = vcmask 64512   ;;  %s614_s7 = sshll.u32 %s793_s18, 1  ;;  %vm467_vm9 = vcmask 1040384  }
   0xe   : > { %370 = vperm.xlu0 %665, %v289_v0   ;;  %s265_s27 = scalar_lea.vmem %s782_s0, %s627_s24  ;;  %v390_v41 = vshrl.u32 %v389_v36, 7  ;;  %v287_v1 = vld [vmem:[%s783_s1] sm:$0xf]  ;;  %vm471_vm10 = vcmp.lt.s32.totalorder %v389_v36, 256  ;;  %s284_s10 = scalar_lea.vmem %s787_s5, %s614_s7 }
   0xf   : > { %v286_v2 = vld [vmem:[%s265_s27] sm:$0xff]  ;;  %s275_s13 = scalar_lea.vmem %s786_s4, %s627_s24 }
  0x10   : > { %v290_v3 = vmul.f32 %v286_v2, %v286_v2  ;;  %v391_v46 = vcvt.s32.f32 %v390_v41 }
  0x12   : > { %292 = vst [vmem:[#allocation1] ss:$2 sm:$0xff] %v290_v3 }
  0x19   : > { %v293_v4 = vld.sshfl [vmem:[#allocation1] sm:$0xff pattern:$0x75316420]  ;;  %v294_v5 = vld.sshfl [vmem:[#allocation1 + $0x8] sm:$0xff pattern:$0x75316420] }
  0x1a   : > { %313 = vst [vmem:[#allocation1] ss:$2 sm:$0xff] %v286_v2  ;;  %v298_v9 = vsel %vm297_vm0, %v293_v4, 0.0  ;;  %v305_v10 = vsel %vm297_vm0, %v294_v5, 0.0  ;;  %v691_v2 = vmov 1.0  }
  0x1b   : > { %v299_v11 = vrot.slane %v298_v9, 4  ;;  %v306_v12 = vrot.slane %v305_v10, 4 }
  0x1d   : > { %v300_v13 = vadd.f32 %v299_v11, %v298_v9  ;;  %v307_v14 = vadd.f32 %v306_v12, %v305_v10 }
  0x1f   : > { %v301_v15 = vrot.slane %v300_v13, 2  ;;  %v308_v16 = vrot.slane %v307_v14, 2 }
  0x21   : > { %v314_v7 = vld.sshfl [vmem:[#allocation1] sm:$0xff pattern:$0x75316420]  ;;  %v315_v8 = vld.sshfl [vmem:[#allocation1 + $0x8] sm:$0xff pattern:$0x75316420]  ;;  %v302_v17 = vadd.f32 %v301_v15, %v300_v13  ;;  %v309_v18 = vadd.f32 %v308_v16, %v307_v14 }
  0x22   : > { %615 = vmatpush.msk.msra.mxu0 %vm297_vm0, %v314_v7  ;;  %617 = vmatpush.msk.msra.mxu1 %vm297_vm0, %v315_v8 }
  0x23   : > { %616 = vmatmul.msk.f32.vlgmr.msra.gmra.mxu0 %vm316_vm1, %v288_v6  ;;  %618 = vmatmul.msk.f32.vlgmr.msra.gmra.mxu1 %vm316_vm1, %v288_v6  ;;  %v303_v19 = vrot.slane %v302_v17, 1  ;;  %v310_v20 = vrot.slane %v309_v18, 1 }
  0x25   : > { %v304_v21 = vadd.f32 %v303_v19, %v302_v17  ;;  %v311_v22 = vadd.f32 %v310_v20, %v309_v18 }
  0x80   : > { %v371_v27 = vpop.permute.xlu0 %370 }
  0xa0   : > { %v341_v23 = vpop.f32.mrf.mxu0  ;;  %v361_v24 = vpop.f32.mrf.mxu1 }
  0xa1   : > { %v364_v25 = vmul.f32 2.0, %v341_v23  ;;  %v365_v26 = vmul.f32 2.0, %v361_v24 }
  0xa3   : > { %v366_v28 = vsub.f32 %v304_v21, %v364_v25  ;;  %v367_v29 = vsub.f32 %v311_v22, %v365_v26 }
  0xa5   : > { %v373_v30 = vadd.f32 %v371_v27, %v366_v28  ;;  %v374_v31 = vadd.f32 %v371_v27, %v367_v29 }
  0xa7   : > { %v375_v32 = vsub.f32 0.0, %v373_v30  ;;  %v376_v33 = vsub.f32 0.0, %v374_v31 }
  0xa9   : > { %v377_v34 = vrot.slane %v375_v32, 4  ;;  %v383_v35 = vrot.slane %v376_v33, 4 }
  0xab   : > { %v378_v37 = vmax.f32 %v375_v32, %v377_v34  ;;  %v384_v38 = vmax.f32 %v376_v33, %v383_v35 }
  0xad   : > { %v379_v39 = vrot.slane %v378_v37, 2  ;;  %v385_v40 = vrot.slane %v384_v38, 2 }
  0xaf   : > { %v380_v42 = vmax.f32 %v378_v37, %v379_v39  ;;  %v386_v43 = vmax.f32 %v384_v38, %v385_v40 }
  0xb1   : > { %v381_v44 = vrot.slane %v380_v42, 1  ;;  %v387_v45 = vrot.slane %v386_v43, 1 }
  0xb3   : > { %v382_v47 = vmax.f32 %v380_v42, %v381_v44  ;;  %v388_v48 = vmax.f32 %v386_v43, %v387_v45 }
  0xb5   : > { %vm392_vm2 = vcmp.eq.f32.partialorder %v375_v32, %v382_v47  ;;  %vm393_vm3 = vcmp.eq.f32.partialorder %v376_v33, %v388_v48 }
  0xb6   : > { %v394_v49 = vsel %vm392_vm2, %v391_v46, 8.0  ;;  %v395_v50 = vsel %vm393_vm3, %v391_v46, 8.0 }
  0xb7   : > { %v396_v51 = vrot.slane %v394_v49, 4  ;;  %v402_v52 = vrot.slane %v395_v50, 4 }
  0xb9   : > { %v397_v53 = vmin.f32 %v394_v49, %v396_v51  ;;  %v403_v54 = vmin.f32 %v395_v50, %v402_v52 }
  0xbb   : > { %v398_v55 = vrot.slane %v397_v53, 2  ;;  %v404_v56 = vrot.slane %v403_v54, 2 }
  0xbd   : > { %v399_v57 = vmin.f32 %v397_v53, %v398_v55  ;;  %v405_v58 = vmin.f32 %v403_v54, %v404_v56 }
  0xbf   : > { %v400_v59 = vrot.slane %v399_v57, 1  ;;  %v406_v60 = vrot.slane %v405_v58, 1 }
  0xc1   : > { %v401_v61 = vmin.f32 %v399_v57, %v400_v59  ;;  %v407_v62 = vmin.f32 %v405_v58, %v406_v60 }
  0xc3   : > { %vm408_vm5 = vcmp.eq.f32.partialorder %v391_v46, %v401_v61  ;;  %vm629_vm6 = vcmp.lt.s32.totalorder %v401_v61, 0  ;;  %v630_v63 = vceil.f32 %v401_v61  ;;  %v631_v0 = vfloor.f32 %v401_v61 }
  0xc4   : > { %621 = vmatpush.msk.msra.mxu2 %vm408_vm5, %v691_v2  ;;  %vm409_vm7 = vcmp.eq.f32.partialorder %v391_v46, %v407_v62  ;;  %vm634_vm8 = vcmp.lt.s32.totalorder %v407_v62, 0  ;;  %v635_v3 = vceil.f32 %v407_v62  ;;  %v636_v4 = vfloor.f32 %v407_v62 }
  0xc5   : > { %623 = vmatpush.msk.msra.mxu3 %vm409_vm7, %v691_v2  ;;  %622 = vmatmul.msk.f32.vlgmr.msra.gmra.mxu2 %vm414_vm4, %v287_v1  ;;  %v632_v5 = vsel %vm629_vm6, %v630_v63, %v631_v0 }
  0xc6   : > { %v637_v6 = vsel %vm634_vm8, %v635_v3, %v636_v4  ;;  %624 = vmatmul.msk.f32.vlgmr.msra.gmra.mxu3 %vm414_vm4, %v287_v1  ;;  %v633_v8 = vcvt.f32.s32 %v632_v5 }
  0xc7   : > { %v638_v7 = vcvt.f32.s32 %v637_v6 }
  0xc9   : > { %v466_v9 = vrot.slane %v638_v7, 7 }
  0xcb   : > { %v468_v10 = vsel %vm467_vm9, %v633_v8, %v466_v9 }
  0xcc   : > { %473 = vst.msk [vmem:[%s284_s10] sm:$0x3] %vm471_vm10, %v468_v10 }
 0x148   : > { %v435_v12 = vpop.f32.mrf.mxu2 }
 0x149   : > { %v455_v11 = vpop.f32.mrf.mxu3 }
 0x14a   : > { %v460_v13 = vrot.slane %v455_v11, 4 }
 0x14c   : > { %v461_v14 = vsel %vm297_vm0, %v435_v12, %v460_v13 }
 0x14d   : > { %463 = vst [vmem:[%s275_s13] sm:$0xff] %v461_v14 }
 0x14e PF: > { %s16_s20 = sadd.s32 1, %s688_s20   ;;  %s788_s18 = smov %s684_s19 }
 0x14f   : > { %p13_p5 = scmp.ge.s32.totalorder %s16_s20, 4   ;;  %s789_s19 = smov %s791_s21 }
 0x151   :  { %15 = sbr.rel (!%p13_p5) target bundleno = 2 (0x2), region = 78 }

</bundles_post_ra>
